<compile_context>
chip_gen: v5e
topology: v5e:2x2
jax: 0.10.0
libtpu: 0.0.40
codegen_flags: <defaults>
</compile_context>

<pallas_src>
import jax
import jax.numpy as jnp
from jax.experimental import pallas as pl
from jax.experimental.pallas import tpu as pltpu

GROUP = 8  # batch rows packed per kernel row (= f32 sublane count)


def _round_up(x, m):
    return ((x + m - 1) // m) * m


def residual_correction_kernel(xr_ref, w1bd_ref, b1t_ref, w2bd_ref, b2_ref,
                               out_ref):
    """fc1 -> ReLU -> fc2 for one tile of GROUP-packed batch rows.

    xr_ref   : [TM8, GROUP*P]      8 batch rows packed per row (f32, streamed)
    w1bd_ref : [GROUP*P, GROUP*H]  block-diagonal fc1 weight (f32, resident)
    b1t_ref  : [1, GROUP*H]        fc1 bias tiled GROUP times (f32, resident)
    w2bd_ref : [GROUP*H, GROUP]    block-diagonal fc2 weight (f32, resident)
    b2_ref   : [1, 1]              fc2 bias (f32, SMEM scalar)
    out_ref  : [TM8, GROUP]        one correction per original batch row
    """
    # fc1 on the MXU (f32 accumulate); bias + ReLU on the VPU.
    h = jnp.dot(xr_ref[...], w1bd_ref[...], preferred_element_type=jnp.float32)
    h = jnp.maximum(h + b1t_ref[...], 0.0)
    # fc2: the block-diagonal weight lets the MXU do the per-row H-reduction,
    # so there is no cross-lane XLU reduce and no single-lane masked store.
    corr = jnp.dot(h, w2bd_ref[...], preferred_element_type=jnp.float32)
    out_ref[...] = corr + b2_ref[0, 0]


def pack_params(w1, b1, w2, b2, *, group=GROUP):
    """Build the (tiny) block-diagonal weights once per parameter set."""
    P, H = w1.shape
    w1 = w1.astype(jnp.float32)
    w2 = jnp.reshape(w2, (H, 1)).astype(jnp.float32)
    return {
        "w1bd": jax.scipy.linalg.block_diag(*([w1] * group)),   # [gP, gH]
        "b1t": jnp.tile(jnp.reshape(b1, (1, H)).astype(jnp.float32),
                        (1, group)),                              # [1, gH]
        "w2bd": jax.scipy.linalg.block_diag(*([w2] * group)),   # [gH, g]
        "b2": jnp.reshape(b2, (1, 1)).astype(jnp.float32),       # [1, 1]
        "dims": (P, H),
    }


def residual_correction_forward(personality_features, packed, *, tm8=1024):
    """ResidualCorrectionModule.forward: returns correction of shape [B, 1]."""
    B, P = personality_features.shape
    P_, H = packed["dims"]
    assert P == P_, (P, P_)
    g = GROUP

    x = personality_features.astype(jnp.float32)
    B_pad = _round_up(B, g)
    if B_pad != B:
        # Rare tail pad (< GROUP rows); the common path is pad-free.
        x = jnp.pad(x, ((0, B_pad - B), (0, 0)))
    BG = B_pad // g
    # Contiguous row-major merge: bitcast, no HBM traffic.
    xr = x.reshape(BG, g * P)

    # Tile of packed rows: large enough to amortize grid-step overhead, at
    # least 2 grid steps (v7x has 2 TensorCores), multiple of 8 (sublane)
    # unless it covers the whole (tiny) batch.
    TM8 = min(tm8, _round_up(pl.cdiv(BG, 2), 8))
    TM8 = max(TM8, 8)
    if TM8 >= BG:
        TM8 = BG
    grid = (pl.cdiv(BG, TM8),)

    out = pl.pallas_call(
        residual_correction_kernel,
        out_shape=jax.ShapeDtypeStruct((BG, g), jnp.float32),
        grid=grid,
        in_specs=[
            # activations: streamed per batch tile, lane-dense
            pl.BlockSpec((TM8, g * P), lambda i: (i, 0)),
            # weights/biases: constant index_map -> VMEM-resident
            pl.BlockSpec((g * P, g * H), lambda i: (0, 0)),
            pl.BlockSpec((1, g * H), lambda i: (0, 0)),
            pl.BlockSpec((g * H, g), lambda i: (0, 0)),
            # scalar fc2 bias in SMEM
            pl.BlockSpec(memory_space=pltpu.MemorySpace.SMEM),
        ],
        out_specs=pl.BlockSpec((TM8, g), lambda i: (i, 0)),
        compiler_params=pltpu.CompilerParams(
            dimension_semantics=("parallel",)),
    )(xr, packed["w1bd"], packed["b1t"], packed["w2bd"], packed["b2"])

    # (BG, g) row-major == (B_pad, 1); garbage tail rows (if any) sliced off.
    return out.reshape(B_pad, 1)[:B]


def init_params(key, personality_dim, hidden_dim):
    ks = jax.random.split(key, 4)
    scale = 0.1
    return {
        "w1": scale * jax.random.normal(ks[0], (personality_dim, hidden_dim),
                                        jnp.float32),
        "b1": scale * jax.random.normal(ks[1], (hidden_dim,), jnp.float32),
        "w2": scale * jax.random.normal(ks[2], (hidden_dim,), jnp.float32),
        "b2": scale * jax.random.normal(ks[3], (), jnp.float32),
    }


if __name__ == "__main__":
    B = 256               # batch
    PERSONALITY_DIM = 16  # personality_feature_dim
    HIDDEN_DIM = 32       # hidden_dim

    key = jax.random.PRNGKey(0)
    k_x, k_p = jax.random.split(key)

    personality_features = jax.random.normal(
        k_x, (B, PERSONALITY_DIM), jnp.float32)
    params = init_params(k_p, PERSONALITY_DIM, HIDDEN_DIM)
    packed = pack_params(params["w1"], params["b1"], params["w2"], params["b2"])

    correction = residual_correction_forward(personality_features, packed)
    jax.block_until_ready(correction)

    # Pure-f32 JAX reference (fc1 -> ReLU -> fc2).
    h = jnp.maximum(personality_features @ params["w1"] + params["b1"], 0.0)
    ref = h @ params["w2"].reshape(HIDDEN_DIM, 1) + params["b2"]

    assert correction.shape == (B, 1)
    err = float(jnp.max(jnp.abs(correction - ref)))
    # Tolerance allows for MXU f32 matmul accumulation-order differences.
    assert jnp.allclose(correction, ref, atol=5e-3, rtol=5e-3), err

    print("KERNEL_OK")
</pallas_src>

<mosaic_0001>
module attributes {stable_mosaic.version = 11 : i64} {
  func.func @residual_correction_kernel(%arg0: i32, %arg1: memref<16x128xf32, #tpu.memory_space<vmem>>, %arg2: memref<128x256xf32, #tpu.memory_space<vmem>>, %arg3: memref<1x256xf32, #tpu.memory_space<vmem>>, %arg4: memref<256x8xf32, #tpu.memory_space<vmem>>, %arg5: memref<1x1xf32, #tpu.memory_space<smem>>, %arg6: memref<16x8xf32, #tpu.memory_space<vmem>>) attributes {dimension_semantics = [#tpu.dimension_semantics<parallel>], iteration_bounds = array<i64: 2>, scalar_prefetch = 0 : i64, scratch_operands = 0 : i64, tpu.core_type = #tpu.core_type<tc>, window_params = [{transform_indices = @transform_0, window_bounds = array<i64: 16, 128>}, {pipeline_mode = #tpu.pipeline_mode<synchronous>, transform_indices = @transform_1, window_bounds = array<i64: 128, 256>}, {pipeline_mode = #tpu.pipeline_mode<synchronous>, transform_indices = @transform_2, window_bounds = array<i64: 1, 256>}, {pipeline_mode = #tpu.pipeline_mode<synchronous>, transform_indices = @transform_3, window_bounds = array<i64: 256, 8>}, {transform_indices = @transform_4, window_bounds = array<i64: 1, 1>}, {transform_indices = @transform_5, window_bounds = array<i64: 16, 8>}]} {
    %c0 = arith.constant 0 : index
    %c0_0 = arith.constant 0 : index
    %0 = vector.load %arg1[%c0, %c0_0] : memref<16x128xf32, #tpu.memory_space<vmem>>, vector<16x128xf32>
    %c0_1 = arith.constant 0 : index
    %c0_2 = arith.constant 0 : index
    %1 = vector.load %arg2[%c0_1, %c0_2] : memref<128x256xf32, #tpu.memory_space<vmem>>, vector<128x256xf32>
    %cst = arith.constant dense<0.000000e+00> : vector<16x256xf32>
    %2 = tpu.matmul %0, %1, %cst {dimension_numbers = #tpu.dot_dimension_numbers<[1], [0], [0], [1], [0, 0, 1, 1], [], []>} : vector<16x128xf32>, vector<128x256xf32>, vector<16x256xf32> -> vector<16x256xf32>
    %c0_3 = arith.constant 0 : index
    %c0_4 = arith.constant 0 : index
    %3 = vector.load %arg3[%c0_3, %c0_4] : memref<1x256xf32, #tpu.memory_space<vmem>>, vector<1x256xf32>
    %4 = vector.broadcast %3 : vector<1x256xf32> to vector<16x256xf32>
    %5 = arith.addf %2, %4 : vector<16x256xf32>
    %cst_5 = arith.constant 0.000000e+00 : f32
    %6 = vector.broadcast %cst_5 : f32 to vector<16x256xf32>
    %7 = arith.maximumf %5, %6 : vector<16x256xf32>
    %c0_6 = arith.constant 0 : index
    %c0_7 = arith.constant 0 : index
    %8 = vector.load %arg4[%c0_6, %c0_7] : memref<256x8xf32, #tpu.memory_space<vmem>>, vector<256x8xf32>
    %cst_8 = arith.constant dense<0.000000e+00> : vector<16x8xf32>
    %9 = tpu.matmul %7, %8, %cst_8 {dimension_numbers = #tpu.dot_dimension_numbers<[1], [0], [0], [1], [0, 0, 1, 1], [], []>} : vector<16x256xf32>, vector<256x8xf32>, vector<16x8xf32> -> vector<16x8xf32>
    %c0_9 = arith.constant 0 : index
    %c0_10 = arith.constant 0 : index
    %10 = memref.load %arg5[%c0_9, %c0_10] : memref<1x1xf32, #tpu.memory_space<smem>>
    %11 = vector.broadcast %10 : f32 to vector<16x8xf32>
    %12 = arith.addf %9, %11 : vector<16x8xf32>
    %c0_11 = arith.constant 0 : index
    %c0_12 = arith.constant 0 : index
    %13 = vector.load %arg6[%c0_11, %c0_12] : memref<16x8xf32, #tpu.memory_space<vmem>>, vector<16x8xf32>
    tpu.vector_store %arg6[%c0_11, %c0_12], %12 {strides = array<i32>} : memref<16x8xf32, #tpu.memory_space<vmem>>, vector<16x8xf32>,
    return
  }
  func.func @transform_0(%arg0: i32) -> (i32, i32) {
    %c0_i32 = arith.constant 0 : i32
    %c0_i32_0 = arith.constant 0 : i32
    return %arg0, %c0_i32 : i32, i32
  }
  func.func @transform_1(%arg0: i32) -> (i32, i32) {
    %c0_i32 = arith.constant 0 : i32
    %c0_i32_0 = arith.constant 0 : i32
    %c0_i32_1 = arith.constant 0 : i32
    return %c0_i32, %c0_i32_0 : i32, i32
  }
  func.func @transform_2(%arg0: i32) -> (i32, i32) {
    %c0_i32 = arith.constant 0 : i32
    %c0_i32_0 = arith.constant 0 : i32
    %c0_i32_1 = arith.constant 0 : i32
    return %c0_i32, %c0_i32_0 : i32, i32
  }
  func.func @transform_3(%arg0: i32) -> (i32, i32) {
    %c0_i32 = arith.constant 0 : i32
    %c0_i32_0 = arith.constant 0 : i32
    %c0_i32_1 = arith.constant 0 : i32
    return %c0_i32, %c0_i32_0 : i32, i32
  }
  func.func @transform_4(%arg0: i32) -> (i32, i32) {
    %c0_i32 = arith.constant 0 : i32
    %c0_i32_0 = arith.constant 0 : i32
    %c0_i32_1 = arith.constant 0 : i32
    return %c0_i32, %c0_i32_0 : i32, i32
  }
  func.func @transform_5(%arg0: i32) -> (i32, i32) {
    %c0_i32 = arith.constant 0 : i32
    %c0_i32_0 = arith.constant 0 : i32
    return %arg0, %c0_i32 : i32, i32
  }
}

</mosaic_0001>

<bundles_post_ra>
// kernel: tpu_custom_call.1
= control target key start
LH: loop header
LB: loop body
LE: loop exit
PB: predicated region body
PF: predicated region fallthrough
CT: control target
= control target key end

     0   :  { %s939_s0 = inlined_call_operand.hbm [shape: f32[32,128], index: 0, kind: input, shape index: {}]   ;;  %s940_s1 = inlined_call_operand.vmem [shape: f32[128,256], index: 1, kind: input, shape index: {}]   ;;  %s941_s2 = inlined_call_operand.vmem [shape: f32[1,256], index: 2, kind: input, shape index: {}]   ;;  %s942_s3 = inlined_call_operand.vmem [shape: f32[256,8], index: 3, kind: input, shape index: {}]   ;;  %s943_s4 = inlined_call_operand.<no memory space> [shape: f32[1,1], index: 4, kind: input, shape index: {}]   ;;  %s944_s5 = inlined_call_operand.vmem [shape: f32[32,8], index: 5, kind: output, shape index: {}]  }
   0x1   :  { %10 = sst [smem:[#allocation2]] %s943_s4 }
   0x2   :  { %11 = vsyncpa [#allocation4], 0 }
   0x3   :  { %13 = vsyncpa [#allocation4 + $0x1], 0  ;;  %s646_s20 = smov 0   ;;  %s648_s21 = smov 0  }
   0x4   :  { %s650_s22 = smov 0   ;;  %s652_s23 = smov 0  }
   0x5 LB: > { %s490_s4 = sadd.s32 4294967295, %s609_s23   ;;  %s666_s24 = sadd.s32 1, %s609_s23   ;;  %s609_s23 = sphi %s652_s23, %s951_s23   ;;  %s605_s22 = sphi %s650_s22, %s950_s22   ;;  %s601_s21 = sphi %s648_s21, %s949_s21   ;;  %s597_s20 = sphi %s646_s20, %s948_s20  }
   0x6   : > { %s23_s25 = ssub.s32 %s609_s23, %s666_s24  ;;  %s26_s26 = sadd.s32 1, %s605_s22 }
   0x7   : > { %p24_p0 = scmp.eq.s32.totalorder %s23_s25, 0  ;;  %p33_p1 = scmp.ne.s32.totalorder %s605_s22, %s601_s21 }
   0x8   : > { %p34_p2 = scmp.eq.s32.totalorder %s609_s23, 0  ;;  %p39_p3 = scmp.ne.s32.totalorder %s601_s21, %s597_s20 }
   0x9   : > { %s676_s27 = scalar_select %p24_p0, %s605_s22, %s26_s26  }
   0xa   : > { %p678_p4 = por %p34_p2, %p33_p1  ;;  %p40_p5 = scmp.eq.s32.totalorder %s490_s4, 0 }
   0xb   : > { %p510_p6 = scmp.lt.s32.totalorder %s609_s23, 2  ;;  %s185_s30 = sand.u32 1, %s605_s22  }
   0xc   : > { %p685_p7 = por %p40_p5, %p39_p3  ;;  %s494_s6 = sshll.u32 %s185_s30, 4 }
   0xd   : > { %s503_s7 = sshll.u32 %s609_s23, 4  ;;  %s189_s11 = scalar_lea.vmem [#allocation3], %s494_s6 }
   0xe   : > { %s194_s10 = scalar_lea.hbm %s939_s0, %s503_s7  ;;  %s197_s12 = sshll.u32 %s189_s11, 4  ;;  %s198_s12 = int_to_ptr.vmem [resolvable:$true] %s197_s12 }
   0xf   : > { %s195_s13 = sshll.u32 %s194_s10, 4  ;;  %p696_p8 = pnand %p510_p6, %p678_p4  ;;  %s196_s13 = int_to_ptr.hbm [resolvable:$true] %s195_s13 }
  0x10   : > { %p497_p9 = scmp.ge.s32.totalorder %s609_s23, 1  ;;  %s186_s15 = scalar_lea.sflag [#allocation4], %s185_s30 }
  0x11   : > { %s545_s16 = sshra.s32 %s196_s13, 4  ;;  %p549_p11 = pneg %p696_p8  ;;  %s546_s16 = int_to_ptr.hbm [resolvable:$true] %s545_s16 }
  0x12   : > { %s547_s17 = scalar_lea.hbm %s546_s16, 16  ;;  %s552_s20 = scalar_lea.hbm %s939_s0, 32 }
  0x13   : > { %p548_p10 = scmp.ne.s32.totalorder %s546_s16, %s547_s17  ;;  %p553_p0 = scmp.lt.s32.totalorder %s546_s16, %s939_s0 }
  0x14   : > { %p554_p1 = scmp.lt.s32.totalorder %s552_s20, %s547_s17 }
  0x15   : > { %p550_p12 = pnand %p549_p11, %p548_p10 }
  0x16   : > { %p555_p2 = por %p554_p1, %p553_p0 }
  0x17   : > { %p551_p13 = pneg %p550_p12 }
  0x19   : > { %p556_p3 = pnand %p555_p2, %p551_p13 }
  0x1b   : > { %559 = shalt.err (!%p556_p3)
}
  0x1c   : > { %s611_s28 = smov 128   ;;  %s612_s30 = smov 8  }
  0x1d   : > { %509 = dma.hbm_to_vmem [thread:$0]  (!%p696_p8), %s196_s13, 256, %s198_s12, %s186_s15, %s611_s28, %s611_s28, %s612_s30  }
  0x1e   : > { %p205_p4 = scmp.lt.s32.totalorder %s609_s23, 3 }
  0x20   : > { %p206_p5 = pnand %p497_p9, %p205_p4 }
  0x21   : > { %s211_s6 = sand.u32 (!%p206_p5), 1, %s601_s21  }
  0x22   : > { %209 = sbr.rel (%p206_p5) target bundleno = 347 (0x15b), region = 40  ;;  %s715_s7 = sshll.u32 (!%p206_p5), %s211_s6, 4 }
  0x23   : > { %s212_s8 = scalar_lea.sflag (!%p206_p5), [#allocation4], %s211_s6  ;;  %s215_s9 = scalar_lea.vmem (!%p206_p5), [#allocation3], %s715_s7 }
  0x27   : > { %592 = dma.done.wait (%p685_p7), %s212_s8, 256  }
  0x28   : > { %594 = vsyncadd (%p685_p7), %s212_s8, 4294967040  ;;  %v282_v0 = vld [vmem:[%s940_s1 + $0xf0] sm:$0xff]  ;;  %v280_v1 = vld [vmem:[%s940_s1 + $0xe0] sm:$0xff]  ;;  %s499_s12 = sshll.u32 %s490_s4, 1  ;;  %s372_s13 = sld [smem:[#allocation2]]  ;;  %vm420_vm0 = vcmask 64512  }
  0x29   : > { %v283_v2 = vld [vmem:[%s940_s1 + $0xf8] sm:$0xff]  ;;  %290 = vmatpush.msra.mxu0 %v282_v0  ;;  %v281_v3 = vld [vmem:[%s940_s1 + $0xe8] sm:$0xff]  ;;  %v278_v4 = vld [vmem:[%s940_s1 + $0xd0] sm:$0xff]  ;;  %p245_p6 = scmp.lt.s32.totalorder %s499_s12, 3 }
  0x2a   : > { %313 = vmatpush.msra.mxu1 %v283_v2  ;;  %v279_v5 = vld [vmem:[%s940_s1 + $0xd8] sm:$0xff]  ;;  %v276_v6 = vld [vmem:[%s940_s1 + $0xc0] sm:$0xff]  ;;  %v277_v7 = vld [vmem:[%s940_s1 + $0xc8] sm:$0xff] }
  0x2b   : > { %291 = vmatpush.msra.mxu0 %v280_v1  ;;  %v274_v8 = vld [vmem:[%s940_s1 + $0xb0] sm:$0xff]  ;;  %v275_v9 = vld [vmem:[%s940_s1 + $0xb8] sm:$0xff]  ;;  %v272_v10 = vld [vmem:[%s940_s1 + $0xa0] sm:$0xff]  ;;  %s953_s12 = smov (!%p245_p6, %s499_s12), 3 }
  0x2c   : > { %314 = vmatpush.msra.mxu1 %v281_v3  ;;  %v273_v11 = vld [vmem:[%s940_s1 + $0xa8] sm:$0xff]  ;;  %v270_v12 = vld [vmem:[%s940_s1 + $0x90] sm:$0xff]  ;;  %v271_v13 = vld [vmem:[%s940_s1 + $0x98] sm:$0xff]  ;;  %s500_s14 = sshll.u32 %s953_s12, 3 }
  0x2d   : > { %292 = vmatpush.msra.mxu0 %v278_v4  ;;  %v355_v14 = vld [vmem:[%s942_s3 + $0x78] sm:$0xff]  ;;  %v354_v15 = vld [vmem:[%s942_s3 + $0x70] sm:$0xff]  ;;  %v268_v16 = vld [vmem:[%s940_s1 + $0x80] sm:$0xff]  ;;  %s248_s17 = scalar_lea.vmem %s944_s5, %s500_s14 }
  0x2e   : > { %315 = vmatpush.msra.mxu1 %v279_v5  ;;  %v269_v17 = vld [vmem:[%s940_s1 + $0x88] sm:$0xff]  ;;  %374 = vmatpush.msra.mxu2 %v355_v14  ;;  %v371_v18 = vld [vmem:[%s942_s3 + $0xf8] sm:$0xff]  ;;  %v370_v20 = vld [vmem:[%s942_s3 + $0xf0] sm:$0xff] }
  0x2f   : > { %293 = vmatpush.msra.mxu0 %v276_v6  ;;  %v353_v19 = vld [vmem:[%s942_s3 + $0x68] sm:$0xff]  ;;  %v266_v21 = vld [vmem:[%s940_s1 + $0x70] sm:$0xff]  ;;  %v267_v22 = vld [vmem:[%s940_s1 + $0x78] sm:$0xff]  ;;  %397 = vmatpush.msra.mxu3 %v371_v18 }
  0x30   : > { %316 = vmatpush.msra.mxu1 %v277_v7  ;;  %375 = vmatpush.msra.mxu2 %v354_v15  ;;  %v352_v23 = vld [vmem:[%s942_s3 + $0x60] sm:$0xff]  ;;  %v369_v24 = vld [vmem:[%s942_s3 + $0xe8] sm:$0xff]  ;;  %v351_v27 = vld [vmem:[%s942_s3 + $0x58] sm:$0xff] }
  0x31   : > { %294 = vmatpush.msra.mxu0 %v274_v8  ;;  %v264_v25 = vld [vmem:[%s940_s1 + $0x60] sm:$0xff]  ;;  %v265_v26 = vld [vmem:[%s940_s1 + $0x68] sm:$0xff]  ;;  %398 = vmatpush.msra.mxu3 %v370_v20  ;;  %v262_v29 = vld [vmem:[%s940_s1 + $0x50] sm:$0xff] }
  0x32   : > { %317 = vmatpush.msra.mxu1 %v275_v9  ;;  %376 = vmatpush.msra.mxu2 %v353_v19  ;;  %v368_v28 = vld [vmem:[%s942_s3 + $0xe0] sm:$0xff]  ;;  %v263_v30 = vld [vmem:[%s940_s1 + $0x58] sm:$0xff]  ;;  %v350_v31 = vld [vmem:[%s942_s3 + $0x50] sm:$0xff] }
  0x33   : > { %295 = vmatpush.msra.mxu0 %v272_v10  ;;  %399 = vmatpush.msra.mxu3 %v369_v24  ;;  %v367_v32 = vld [vmem:[%s942_s3 + $0xd8] sm:$0xff]  ;;  %v260_v33 = vld [vmem:[%s940_s1 + $0x40] sm:$0xff]  ;;  %v261_v34 = vld [vmem:[%s940_s1 + $0x48] sm:$0xff] }
  0x34   : > { %318 = vmatpush.msra.mxu1 %v273_v11  ;;  %377 = vmatpush.msra.mxu2 %v352_v23  ;;  %v349_v35 = vld [vmem:[%s942_s3 + $0x48] sm:$0xff]  ;;  %v366_v36 = vld [vmem:[%s942_s3 + $0xd0] sm:$0xff]  ;;  %v259_v38 = vld [vmem:[%s940_s1 + $0x38] sm:$0xff] }
  0x35   : > { %296 = vmatpush.msra.mxu0 %v270_v12  ;;  %400 = vmatpush.msra.mxu3 %v368_v28  ;;  %v258_v37 = vld [vmem:[%s940_s1 + $0x30] sm:$0xff]  ;;  %v348_v39 = vld [vmem:[%s942_s3 + $0x40] sm:$0xff]  ;;  %v365_v40 = vld [vmem:[%s942_s3 + $0xc8] sm:$0xff] }
  0x36   : > { %319 = vmatpush.msra.mxu1 %v271_v13  ;;  %378 = vmatpush.msra.mxu2 %v351_v27  ;;  %v256_v41 = vld [vmem:[%s940_s1 + $0x20] sm:$0xff]  ;;  %v257_v42 = vld [vmem:[%s940_s1 + $0x28] sm:$0xff]  ;;  %v347_v43 = vld [vmem:[%s942_s3 + $0x38] sm:$0xff] }
  0x37   : > { %297 = vmatpush.msra.mxu0 %v268_v16  ;;  %401 = vmatpush.msra.mxu3 %v367_v32  ;;  %v364_v44 = vld [vmem:[%s942_s3 + $0xc0] sm:$0xff]  ;;  %v254_v45 = vld [vmem:[%s940_s1 + $0x10] sm:$0xff]  ;;  %v255_v46 = vld [vmem:[%s940_s1 + $0x18] sm:$0xff] }
  0x38   : > { %320 = vmatpush.msra.mxu1 %v269_v17  ;;  %379 = vmatpush.msra.mxu2 %v350_v31  ;;  %v346_v47 = vld [vmem:[%s942_s3 + $0x30] sm:$0xff]  ;;  %v363_v48 = vld [vmem:[%s942_s3 + $0xb8] sm:$0xff]  ;;  %v252_v49 = vld [vmem:[%s940_s1] sm:$0xff]  ;;  %v373_v17 = vstv %s372_s13 }
  0x39   : > { %298 = vmatpush.msra.mxu0 %v266_v21  ;;  %402 = vmatpush.msra.mxu3 %v366_v36  ;;  %v253_v50 = vld [vmem:[%s940_s1 + $0x8] sm:$0xff]  ;;  %v250_v51 = vld [vmem:[%s215_s9] sm:$0xff]  ;;  %v343_v56 = vld [vmem:[%s942_s3 + $0x18] sm:$0xff] }
  0x3a   : > { %321 = vmatpush.msra.mxu1 %v267_v22  ;;  %380 = vmatpush.msra.mxu2 %v349_v35  ;;  %v345_v52 = vld [vmem:[%s942_s3 + $0x28] sm:$0xff]  ;;  %v362_v53 = vld [vmem:[%s942_s3 + $0xb0] sm:$0xff]  ;;  %v344_v54 = vld [vmem:[%s942_s3 + $0x20] sm:$0xff] }
  0x3b   : > { %299 = vmatpush.msra.mxu0 %v264_v25  ;;  %403 = vmatpush.msra.mxu3 %v365_v40  ;;  %v361_v55 = vld [vmem:[%s942_s3 + $0xa8] sm:$0xff]  ;;  %v360_v57 = vld [vmem:[%s942_s3 + $0xa0] sm:$0xff]  ;;  %v342_v59 = vld [vmem:[%s942_s3 + $0x10] sm:$0xff] }
  0x3c   : > { %322 = vmatpush.msra.mxu1 %v265_v26  ;;  %381 = vmatpush.msra.mxu2 %v348_v39  ;;  %v251_v58 = vld [vmem:[%s215_s9 + $0x8] sm:$0xff]  ;;  %v358_v62 = vld [vmem:[%s942_s3 + $0x90] sm:$0xff]  ;;  %v340_v63 = vld [vmem:[%s942_s3] sm:$0xff] }
  0x3d   : > { %300 = vmatpush.msra.mxu0 %v262_v29  ;;  %404 = vmatpush.msra.mxu3 %v364_v44  ;;  %v359_v60 = vld [vmem:[%s942_s3 + $0x98] sm:$0xff]  ;;  %v341_v61 = vld [vmem:[%s942_s3 + $0x8] sm:$0xff]  ;;  %v356_v1 = vld [vmem:[%s942_s3 + $0x80] sm:$0xff] }
  0x3e   : > { %323 = vmatpush.msra.mxu1 %v263_v30  ;;  %382 = vmatpush.msra.mxu2 %v347_v43  ;;  %v357_v0 = vld [vmem:[%s942_s3 + $0x88] sm:$0xff]  ;;  %v284_v2 = vld [vmem:[%s941_s2] sm:$0x3] }
  0x3f   : > { %301 = vmatpush.msra.mxu0 %v260_v33  ;;  %405 = vmatpush.msra.mxu3 %v363_v48  ;;  %v286_v3 = vperm.slane %v284_v2, 0  ;;  %v287_v4 = vperm.slane %v284_v2, 1 }
  0x40   : > { %324 = vmatpush.msra.mxu1 %v261_v34  ;;  %383 = vmatpush.msra.mxu2 %v346_v47 }
  0x41   : > { %302 = vmatpush.msra.mxu0 %v258_v37  ;;  %406 = vmatpush.msra.mxu3 %v362_v53 }
  0x42   : > { %325 = vmatpush.msra.mxu1 %v259_v38  ;;  %384 = vmatpush.msra.mxu2 %v345_v52 }
  0x43   : > { %303 = vmatpush.msra.mxu0 %v256_v41  ;;  %407 = vmatpush.msra.mxu3 %v361_v55 }
  0x44   : > { %326 = vmatpush.msra.mxu1 %v257_v42  ;;  %385 = vmatpush.msra.mxu2 %v344_v54 }
  0x45   : > { %304 = vmatpush.msra.mxu0 %v254_v45  ;;  %408 = vmatpush.msra.mxu3 %v360_v57 }
  0x46   : > { %327 = vmatpush.msra.mxu1 %v255_v46  ;;  %386 = vmatpush.msra.mxu2 %v343_v56 }
  0x47   : > { %305 = vmatpush.msra.mxu0 %v252_v49  ;;  %409 = vmatpush.msra.mxu3 %v359_v60 }
  0x48   : > { %328 = vmatpush.msra.mxu1 %v253_v50  ;;  %306 = vmatmul.f32.vlgmr.msra.gmra.mxu0 %v250_v51 }
  0x49   : > { %329 = vmatmul.f32.vlgmr.msra.gmra.mxu1 %v250_v51  ;;  %387 = vmatpush.msra.mxu2 %v342_v59 }
  0x4a   : > { %410 = vmatpush.msra.mxu3 %v358_v62 }
  0x4b   : > { %388 = vmatpush.msra.mxu2 %v341_v61 }
  0x4c   : > { %411 = vmatpush.msra.mxu3 %v357_v0 }
  0x4d   : > { %389 = vmatpush.msra.mxu2 %v340_v63 }
  0x4e   : > { %412 = vmatpush.msra.mxu3 %v356_v1 }
  0x50   : > { %309 = vmatmul.f32.gmra.mxu0 %v251_v58 }
  0x51   : > { %332 = vmatmul.f32.gmra.mxu1 %v251_v58 }
  0xc5   : > { %v307_v5 = vpop.f32.mrf.mxu0 }
  0xc6   : > { %v330_v6 = vpop.f32.mrf.mxu1  ;;  %v308_v7 = vadd.f32 %v307_v5, %v286_v3 }
  0xc7   : > { %v331_v8 = vadd.f32 %v330_v6, %v287_v4 }
  0xc8   : > { %v336_v9 = vmax.f32 %v308_v7, 0.0 }
  0xc9   : > { %v337_v10 = vmax.f32 %v331_v8, 0.0 }
  0xca   : > { %390 = vmatmul.f32.vlgmr.msra.gmra.mxu2 %v336_v9 }
  0xcb   : > { %413 = vmatmul.f32.vlgmr.msra.gmra.mxu3 %v337_v10 }
  0xcd   : > { %v310_v11 = vpop.f32.mrf.mxu0 }
  0xce   : > { %v333_v12 = vpop.f32.mrf.mxu1  ;;  %v311_v13 = vadd.f32 %v310_v11, %v286_v3 }
  0xcf   : > { %v334_v14 = vadd.f32 %v333_v12, %v287_v4 }
  0xd0   : > { %v338_v15 = vmax.f32 %v311_v13, 0.0 }
  0xd1   : > { %v339_v16 = vmax.f32 %v334_v14, 0.0 }
  0xd2   : > { %393 = vmatmul.f32.gmra.mxu2 %v338_v15 }
  0xd3   : > { %416 = vmatmul.f32.gmra.mxu3 %v339_v16 }
 0x14d   : > { %v391_v18 = vpop.f32.mrf.mxu2 }
 0x14e   : > { %v414_v19 = vpop.f32.mrf.mxu3  ;;  %v392_v20 = vadd.f32 %v391_v18, %v373_v17 }
 0x150   : > { %v415_v21 = vadd.f32 %v414_v19, %v392_v20 }
 0x152   : > { %421 = vst.msk [vmem:[%s248_s17] sm:$0xff] %vm420_vm0, %v415_v21 }
 0x155   : > { %v394_v22 = vpop.f32.mrf.mxu2 }
 0x156   : > { %v417_v23 = vpop.f32.mrf.mxu3  ;;  %v395_v24 = vadd.f32 %v394_v22, %v373_v17 }
 0x158   : > { %v418_v25 = vadd.f32 %v417_v23, %v395_v24 }
 0x15a   : > { %422 = vst.msk [vmem:[%s248_s17 + $0x8] sm:$0xff] %vm420_vm0, %v418_v25 }
 0x15b PF: > { %p16_p7 = scmp.ge.s32.totalorder %s666_s24, 4   ;;  %s948_s20 = smov %s601_s21 }
 0x15c   : > { %s949_s21 = smov %s605_s22  ;;  %s950_s22 = smov %s676_s27 }
 0x15d   : > { %s951_s23 = smov %s666_s24  ;;  %18 = sbr.rel (!%p16_p7) target bundleno = 5 (0x5), region = 80 }
 0x162   :  { %445 = vsyncpa [#allocation4], 1 }
 0x163   :  { %447 = vsyncpa [#allocation4 + $0x1], 1 }

</bundles_post_ra>
